<compile_context>
chip_gen: v6e
topology: v6e:2x2x1
jax: 0.10.0
libtpu: 0.0.40
codegen_flags: <defaults>
</compile_context>

<pallas_src>
import functools

import jax
import jax.numpy as jnp
from jax.experimental import pallas as pl
from jax.experimental.pallas import tpu as pltpu


def _policy_kernel(x_ref, w1_ref, b1_ref, w2_ref, b2_ref, o_ref, *, scale, neg_slope):
    # x_ref:  (tile_b, in_dim)
    # w1_ref: (in_dim, hidden),  b1_ref: (1, hidden)
    # w2_ref: (hidden, out_dim), b2_ref: (1, out_dim)
    h = jnp.dot(x_ref[...], w1_ref[...], preferred_element_type=jnp.float32)
    h = h + b1_ref[...]                              # broadcast bias add (VPU)
    # LeakyReLU (PyTorch default negative_slope = 0.01)
    h = jnp.where(h > 0.0, h, neg_slope * h)
    o = jnp.dot(h, w2_ref[...], preferred_element_type=jnp.float32)
    o = o + b2_ref[...]
    # TODO(synk): the (tile_b, 2) store is lane-sparse (masked vst + narrow
    # output DMA).  Packing out_dim into lanes as a (tile_b*2//128, 128) slab
    # (bitcast-reshaped back to (B, 2) in the wrapper for free) would make the
    # store lane-dense, but requires an in-kernel minor-dim reshape that Mosaic
    # may not lower on all generations, so it is intentionally left out.
    o_ref[...] = (jnp.tanh(o) * scale).astype(o_ref.dtype)


def _round_up(x, m):
    return (x + m - 1) // m * m


def policy_forward(state, w1, b1, w2, b2, *, scale=0.5, neg_slope=0.01, tile_b=4096):
    """Pallas-backed forward pass of the Policy MLP.

    state: (B, input_size) float32
    w1:    (input_size, hidden) float32   (transposed vs torch Linear layout)
    b1:    (hidden,) float32
    w2:    (hidden, output_size) float32
    b2:    (output_size,) float32
    returns (B, output_size) float32
    """
    B, in_dim = state.shape
    hidden = w1.shape[1]
    out_dim = w2.shape[1]

    # Free (metadata-only) reshapes so the kernel sees 2-D bias operands.
    b1_2d = b1.reshape(1, hidden)
    b2_2d = b2.reshape(1, out_dim)

    kernel = functools.partial(_policy_kernel, scale=scale, neg_slope=neg_slope)
    # TODO(synk): if scale/neg_slope ever vary at runtime, pass them as SMEM
    # scalars instead of baking them (avoids a recompile per value).

    cost = pl.CostEstimate(
        flops=2 * B * (in_dim * hidden + hidden * out_dim),
        transcendentals=B * out_dim,
        bytes_accessed=4 * (B * in_dim + in_dim * hidden + hidden
                            + hidden * out_dim + out_dim + B * out_dim),
    )

    # Keep the batch tile a multiple of 8 (sublane constraint on the block).
    tile_b = max(8, _round_up(int(tile_b), 8))

    if B <= tile_b:
        # Gridless path: single invocation, whole operands resident in VMEM.
        return pl.pallas_call(
            kernel,
            out_shape=jax.ShapeDtypeStruct((B, out_dim), jnp.float32),
            in_specs=[pl.BlockSpec(memory_space=pltpu.MemorySpace.VMEM)] * 5,
            out_specs=pl.BlockSpec(memory_space=pltpu.MemorySpace.VMEM),
            cost_estimate=cost,
        )(state, w1, b1_2d, w2, b2_2d)

    # Large-batch path (vectorized RL envs): tile the batch axis, keep the tiny
    # weights/biases full-extent (resident in VMEM across all grid steps), and
    # mark the batch axis "parallel" so it shards across TensorCores on v7x.
    # No padding / slicing: the last block may be partial (reads padded, writes
    # masked) and each output row only depends on its own input row.
    n_blocks = pl.cdiv(B, tile_b)
    tile = max(8, _round_up(pl.cdiv(B, n_blocks), 8))   # balance work per step
    grid = (pl.cdiv(B, tile),)

    return pl.pallas_call(
        kernel,
        out_shape=jax.ShapeDtypeStruct((B, out_dim), jnp.float32),
        grid_spec=pl.GridSpec(
            grid=grid,
            in_specs=[
                pl.BlockSpec((tile, in_dim), lambda i: (i, 0)),
                pl.BlockSpec((in_dim, hidden), lambda i: (0, 0)),
                pl.BlockSpec((1, hidden), lambda i: (0, 0)),
                pl.BlockSpec((hidden, out_dim), lambda i: (0, 0)),
                pl.BlockSpec((1, out_dim), lambda i: (0, 0)),
            ],
            out_specs=pl.BlockSpec((tile, out_dim), lambda i: (i, 0)),
        ),
        compiler_params=pltpu.CompilerParams(
            dimension_semantics=("parallel",),
            # Lane padding makes each (tile, *) f32 block occupy tile*128*4 B in
            # VMEM; 32 MiB comfortably covers double-buffered input/output plus
            # the hidden intermediate at tile=4096 on every generation
            # (v5e default scoped limit is only 16 MiB; v7x physical is 64 MiB).
            vmem_limit_bytes=32 * 1024 * 1024,
        ),
        cost_estimate=cost,
    )(state, w1, b1_2d, w2, b2_2d)


def reference_forward(state, w1, b1, w2, b2, *, scale=0.5, neg_slope=0.01):
    h = state @ w1 + b1
    h = jnp.where(h > 0, h, neg_slope * h)
    o = jnp.tanh(h @ w2 + b2)
    return o * scale


if __name__ == "__main__":
    key = jax.random.PRNGKey(0)
    k_state, k_w1, k_b1, k_w2, k_b2, k_big = jax.random.split(key, 6)

    batch = 8
    input_size = 4
    hidden_size = 32
    output_size = 2

    # PyTorch Linear-style uniform(-1/sqrt(fan_in), 1/sqrt(fan_in)) init.
    bound1 = 1.0 / float(jnp.sqrt(jnp.float32(input_size)))
    bound2 = 1.0 / float(jnp.sqrt(jnp.float32(hidden_size)))
    w1 = jax.random.uniform(k_w1, (input_size, hidden_size), jnp.float32, -bound1, bound1)
    b1 = jax.random.uniform(k_b1, (hidden_size,), jnp.float32, -bound1, bound1)
    w2 = jax.random.uniform(k_w2, (hidden_size, output_size), jnp.float32, -bound2, bound2)
    b2 = jax.random.uniform(k_b2, (output_size,), jnp.float32, -bound2, bound2)

    # Small batch: gridless path.
    state = jax.random.normal(k_state, (batch, input_size), jnp.float32)
    out = jax.block_until_ready(policy_forward(state, w1, b1, w2, b2))
    ref = reference_forward(state, w1, b1, w2, b2)
    assert out.shape == (batch, output_size)
    assert jnp.allclose(out, ref, atol=1e-5, rtol=1e-5), "small-batch mismatch vs reference"

    # Larger batch (not a multiple of the tile): tiled, parallel-grid path with
    # a partial edge block (no wrapper-side pad/slice).
    big_batch = 300
    big_state = jax.random.normal(k_big, (big_batch, input_size), jnp.float32)
    out_big = jax.block_until_ready(policy_forward(big_state, w1, b1, w2, b2, tile_b=128))
    ref_big = reference_forward(big_state, w1, b1, w2, b2)
    assert out_big.shape == (big_batch, output_size)
    assert jnp.allclose(out_big, ref_big, atol=1e-5, rtol=1e-5), "large-batch mismatch vs reference"

    print("KERNEL_OK")
</pallas_src>

<mosaic_0001>
module attributes {stable_mosaic.version = 11 : i64} {
  func.func @_policy_kernel(%arg0: memref<8x4xf32, #tpu.memory_space<vmem>>, %arg1: memref<4x32xf32, #tpu.memory_space<vmem>>, %arg2: memref<1x32xf32, #tpu.memory_space<vmem>>, %arg3: memref<32x2xf32, #tpu.memory_space<vmem>>, %arg4: memref<1x2xf32, #tpu.memory_space<vmem>>, %arg5: memref<8x2xf32, #tpu.memory_space<vmem>>) attributes {dimension_semantics = [], scalar_prefetch = 0 : i64, scratch_operands = 0 : i64, tpu.core_type = #tpu.core_type<tc>} {
    %c0 = arith.constant 0 : index
    %c0_0 = arith.constant 0 : index
    %0 = vector.load %arg0[%c0, %c0_0] : memref<8x4xf32, #tpu.memory_space<vmem>>, vector<8x4xf32>
    %c0_1 = arith.constant 0 : index
    %c0_2 = arith.constant 0 : index
    %1 = vector.load %arg1[%c0_1, %c0_2] : memref<4x32xf32, #tpu.memory_space<vmem>>, vector<4x32xf32>
    %cst = arith.constant dense<0.000000e+00> : vector<8x32xf32>
    %2 = tpu.matmul %0, %1, %cst {dimension_numbers = #tpu.dot_dimension_numbers<[1], [0], [0], [1], [0, 0, 1, 1], [], []>} : vector<8x4xf32>, vector<4x32xf32>, vector<8x32xf32> -> vector<8x32xf32>
    %c0_3 = arith.constant 0 : index
    %c0_4 = arith.constant 0 : index
    %3 = vector.load %arg2[%c0_3, %c0_4] : memref<1x32xf32, #tpu.memory_space<vmem>>, vector<1x32xf32>
    %4 = vector.broadcast %3 : vector<1x32xf32> to vector<8x32xf32>
    %5 = arith.addf %2, %4 : vector<8x32xf32>
    %cst_5 = arith.constant 0.000000e+00 : f32
    %6 = vector.broadcast %cst_5 : f32 to vector<8x32xf32>
    %7 = arith.cmpf ogt, %5, %6 : vector<8x32xf32>
    %cst_6 = arith.constant 0.00999999977 : f32
    %8 = vector.broadcast %cst_6 : f32 to vector<8x32xf32>
    %9 = arith.mulf %8, %5 : vector<8x32xf32>
    %10 = arith.select %7, %5, %9 : vector<8x32xi1>, vector<8x32xf32>
    %c0_7 = arith.constant 0 : index
    %c0_8 = arith.constant 0 : index
    %11 = vector.load %arg3[%c0_7, %c0_8] : memref<32x2xf32, #tpu.memory_space<vmem>>, vector<32x2xf32>
    %cst_9 = arith.constant dense<0.000000e+00> : vector<8x2xf32>
    %12 = tpu.matmul %10, %11, %cst_9 {dimension_numbers = #tpu.dot_dimension_numbers<[1], [0], [0], [1], [0, 0, 1, 1], [], []>} : vector<8x32xf32>, vector<32x2xf32>, vector<8x2xf32> -> vector<8x2xf32>
    %c0_10 = arith.constant 0 : index
    %c0_11 = arith.constant 0 : index
    %13 = vector.load %arg4[%c0_10, %c0_11] : memref<1x2xf32, #tpu.memory_space<vmem>>, vector<1x2xf32>
    %14 = vector.broadcast %13 : vector<1x2xf32> to vector<8x2xf32>
    %15 = arith.addf %12, %14 : vector<8x2xf32>
    %16 = math.tanh %15 : vector<8x2xf32>
    %cst_12 = arith.constant 5.000000e-01 : f32
    %17 = vector.broadcast %cst_12 : f32 to vector<8x2xf32>
    %18 = arith.mulf %16, %17 : vector<8x2xf32>
    %c0_13 = arith.constant 0 : index
    %c0_14 = arith.constant 0 : index
    %19 = vector.load %arg5[%c0_13, %c0_14] : memref<8x2xf32, #tpu.memory_space<vmem>>, vector<8x2xf32>
    tpu.vector_store %arg5[%c0_13, %c0_14], %18 {strides = array<i32>} : memref<8x2xf32, #tpu.memory_space<vmem>>, vector<8x2xf32>,
    return
  }
}

</mosaic_0001>

<bundles_post_ra>
// kernel: tpu_custom_call.1
= control target key start
LH: loop header
LB: loop body
LE: loop exit
PB: predicated region body
PF: predicated region fallthrough
CT: control target
= control target key end

     0   :  { %vm33_vm0 = vcmask 1043456   ;;  %vm29_vm1 = vcmask 31744   ;;  %v235_v0 = vmov 0.0   ;;  %vm236_vm2 = vmmov 0   ;;  %s294_s1 = inlined_call_operand.vmem [shape: f32[4,32], index: 1, kind: input, shape index: {}]   ;;  %s295_s0 = inlined_call_operand.vmem [shape: f32[8,4], index: 0, kind: input, shape index: {}]   ;;  %s296_s3 = inlined_call_operand.vmem [shape: f32[32,2], index: 3, kind: input, shape index: {}]   ;;  %s297_s2 = inlined_call_operand.vmem [shape: f32[1,32], index: 2, kind: input, shape index: {}]   ;;  %s298_s4 = inlined_call_operand.vmem [shape: f32[1,2], index: 4, kind: input, shape index: {}]   ;;  %s299_s5 = inlined_call_operand.vmem [shape: f32[8,2], index: 5, kind: output, shape index: {}]  }
   0x1   :  { %215 = vmatprep.subr.mxu0 %v235_v0  ;;  %v21_v1 = vld [vmem:[%s294_s1] sm:$0xf]  ;;  %217 = vmatprep.mubr.msk.f32.mxu0 %vm236_vm2, %v235_v0  ;;  %v113_v3 = vld [vmem:[%s296_s3 + $0x18] sm:$0xff]  ;;  %v112_v4 = vld [vmem:[%s296_s3 + $0x10] sm:$0xff]  ;;  %vm121_vm4 = vcmask 261120   ;;  %vm197_vm5 = vcmask 15360  }
   0x2   :  { %v20_v2 = vld [vmem:[%s295_s0] sm:$0xff]  ;;  %216 = vmatpush3.msk.msra.mxu0 %vm33_vm0, %v21_v1  ;;  %220 = vmatprep.subr.mxu1 %v235_v0  ;;  %v111_v5 = vld [vmem:[%s296_s3 + $0x8] sm:$0xff] }
   0x3   :  { %218 = vmatmul.mubr.msk.f32.vlgmr.msra.gmra.mxu0 %vm29_vm1, %v20_v2  ;;  %221 = vmatpush3.msra.mxu1 %v113_v3  ;;  %v110_v6 = vld [vmem:[%s296_s3] sm:$0xff] }
   0x4   :  { %222 = vmatprep.subr.mxu1 %v235_v0  ;;  %228 = vmatprep.mubr.msk.f32.mxu1 %vm236_vm2, %v235_v0  ;;  %v203_v7 = vld [vmem:[%s297_s2] ss:$0 sm:$0xff] }
   0x5   :  { %223 = vmatpush3.msra.mxu1 %v112_v4  ;;  %v206_v13 = vld [vmem:[%s298_s4] ss:$0 sm:$0xff] }
   0x6   :  { %224 = vmatprep.subr.mxu1 %v235_v0 }
   0x7   :  { %225 = vmatpush3.msra.mxu1 %v111_v5 }
   0x8   :  { %226 = vmatprep.subr.mxu1 %v235_v0 }
   0x9   :  { %227 = vmatpush3.msra.mxu1 %v110_v6 }
  0xc3   :  { %v103_v8 = vpop.f32.mrf.mxu0 }
  0xc4   :  { %v104_v9 = vadd.f32 %v203_v7, %v103_v8 }
  0xc5   :  { %v219_v10 = vpop.f32.mrf.mxu0 }
  0xc6   :  { %vm107_vm3 = vcmp.gt.f32.partialorder %v104_v9, 0.0  ;;  %v108_v11 = vmul.f32 0.01, %v104_v9 }
  0xc8   :  { %v109_v12 = vsel %vm107_vm3, %v104_v9, %v108_v11 }
  0xc9   :  { %229 = vmatmul.mubr.msk.f32.vlgmr.msra.gmra.mxu1 %vm121_vm4, %v109_v12 }
 0x189   :  { %v191_v14 = vpop.f32.mrf.mxu1 }
 0x18a   :  { %v192_v15 = vadd.f32 %v206_v13, %v191_v14 }
 0x18b   :  { %v230_v16 = vpop.f32.mrf.mxu1 }
 0x18c   :  { %233 = vtanh.f32 %v192_v15 }
 0x199   :  { %v234_v17 = vpop.eup %233 }
 0x19a   :  { %v196_v18 = vmul.f32 0.5, %v234_v17 }
 0x19c   :  { %198 = vst.msk [vmem:[%s299_s5] sm:$0xff] %vm197_vm5, %v196_v18 }

</bundles_post_ra>
